<compile_context>
chip_gen: v7x
topology: tpu7x:2x2x1
jax: 0.10.0
libtpu: 0.0.40
codegen_flags: <defaults>
</compile_context>

<pallas_src>
import jax
import jax.numpy as jnp
from jax.experimental import pallas as pl
from jax.experimental.pallas import tpu as pltpu

_LANE = 128


def _squared_relu_kernel(x_ref, o_ref):
    x = x_ref[...]
    r = jnp.maximum(x, 0)          # vmax vs splat constant; no zero tile materialized
    o_ref[...] = r * r


def _chip_params():
    """(target_block_bytes, min_grid_steps) tuned per TPU generation."""
    try:
        kind = jax.devices()[0].device_kind.lower()
    except Exception:  # pragma: no cover - defensive; fall back to safe defaults
        kind = ""
    if "tpu7" in kind or "v7" in kind:
        # v7x: 2 TCs/chip -> keep grid even & >= 2x TC count; 64 MiB VMEM /
        # 32 MiB scoped default comfortably holds 4 MiB in + 4 MiB out, x2 bufs.
        return 4 * 1024 * 1024, 8
    if "v6" in kind:
        return 4 * 1024 * 1024, 4
    if "v5 lite" in kind or "v5e" in kind or "v5lite" in kind:
        # v5e scoped VMEM default is 16 MiB; stay at 2 MiB blocks (8 MiB total).
        return 2 * 1024 * 1024, 4
    return 2 * 1024 * 1024, 4


def squared_relu(x: jnp.ndarray) -> jnp.ndarray:
    """Elementwise relu(x)**2. Preserves shape & dtype. (inplace has no JAX meaning.)"""
    orig_shape = x.shape
    dtype = x.dtype
    n = x.size
    if n == 0:
        return x
    itemsize = jnp.dtype(dtype).itemsize

    if n % _LANE != 0:
        # Rare unaligned tail: a standalone kernel would need a pad + slice
        # round-trip (~2x HBM traffic). Let XLA handle/fuse the tiny case.
        r = jnp.maximum(x, 0)
        return (r * r).astype(dtype)

    rows = n // _LANE
    x2d = x.reshape(rows, _LANE)

    target_block_bytes, min_steps = _chip_params()

    # Minimum sublane granularity per dtype: 8 (f32), 16 (bf16), 32 (int8/fp8).
    sublane = max(8, 32 // itemsize)
    row_bytes = _LANE * itemsize

    tile_rows = (target_block_bytes // row_bytes) // sublane * sublane
    tile_rows = max(sublane, tile_rows)

    total_bytes = n * itemsize
    if total_bytes > 512 * 1024:
        # Keep at least `min_steps` grid steps so the pipeline actually
        # overlaps DMA with compute (and both v7x TCs are fed).
        per_step_rows = pl.cdiv(rows, min_steps)
        per_step_rows = pl.cdiv(per_step_rows, sublane) * sublane
        tile_rows = max(sublane, min(tile_rows, per_step_rows))

    if tile_rows > rows:
        # Tiny input: one full-extent block (block dims equal array dims -> legal).
        tile_rows = rows

    grid = (pl.cdiv(rows, tile_rows),)

    out2d = pl.pallas_call(
        _squared_relu_kernel,
        out_shape=jax.ShapeDtypeStruct((rows, _LANE), dtype),
        grid=grid,
        in_specs=[pl.BlockSpec((tile_rows, _LANE), lambda i: (i, 0))],
        out_specs=pl.BlockSpec((tile_rows, _LANE), lambda i: (i, 0)),
        compiler_params=pltpu.CompilerParams(
            dimension_semantics=("parallel",)),
    )(x2d)

    return out2d.reshape(orig_shape)


def _ref(x):
    r = jnp.maximum(x, 0)
    return r * r


if __name__ == "__main__":
    key = jax.random.PRNGKey(0)
    k0, k1, k2 = jax.random.split(key, 3)

    # Small NCHW-shaped input consistent with a conv activation.
    x = jax.random.normal(k0, (2, 4, 16, 16), dtype=jnp.float32)
    out = jax.block_until_ready(squared_relu(x))
    assert out.shape == x.shape and out.dtype == x.dtype
    assert jnp.allclose(out, _ref(x), atol=1e-6), "mismatch (small aligned case)"

    # Mid-size aligned input: exercises the multi-step pipelined grid.
    x_big = jax.random.normal(k1, (8, 32, 32, 32), dtype=jnp.float32)  # 256 KiB+
    out_big = jax.block_until_ready(squared_relu(x_big))
    assert out_big.shape == x_big.shape and out_big.dtype == x_big.dtype
    assert jnp.allclose(out_big, _ref(x_big), atol=1e-6), "mismatch (multi-block case)"

    # bf16 path (same dtype in/out, matching a bf16 PyTorch module).
    x_bf = jax.random.normal(k2, (2, 4, 16, 16), dtype=jnp.bfloat16)
    out_bf = jax.block_until_ready(squared_relu(x_bf))
    assert out_bf.shape == x_bf.shape and out_bf.dtype == x_bf.dtype
    assert jnp.allclose(out_bf.astype(jnp.float32), _ref(x_bf).astype(jnp.float32),
                        atol=1e-2), "mismatch (bf16 case)"

    # Non-128-aligned size: takes the fused jnp fallback (no pad/slice traffic).
    x_odd = jax.random.normal(jax.random.PRNGKey(1), (3, 5, 7), dtype=jnp.float32)
    out_odd = jax.block_until_ready(squared_relu(x_odd))
    assert out_odd.shape == x_odd.shape and out_odd.dtype == x_odd.dtype
    assert jnp.allclose(out_odd, _ref(x_odd), atol=1e-6), "mismatch (unaligned case)"

    print("KERNEL_OK")
</pallas_src>

<mosaic_0001>
module attributes {stable_mosaic.version = 11 : i64} {
  func.func @_squared_relu_kernel(%arg0: i32, %arg1: memref<16x128xf32, #tpu.memory_space<vmem>>, %arg2: memref<16x128xf32, #tpu.memory_space<vmem>>) attributes {dimension_semantics = [#tpu.dimension_semantics<parallel>], iteration_bounds = array<i64: 1>, scalar_prefetch = 0 : i64, scratch_operands = 0 : i64, tpu.core_type = #tpu.core_type<tc>, window_params = [{transform_indices = @transform_0, window_bounds = array<i64: 16, 128>}, {transform_indices = @transform_1, window_bounds = array<i64: 16, 128>}]} {
    %c0 = arith.constant 0 : index
    %c0_0 = arith.constant 0 : index
    %0 = vector.load %arg1[%c0, %c0_0] : memref<16x128xf32, #tpu.memory_space<vmem>>, vector<16x128xf32>
    %cst = arith.constant 0.000000e+00 : f32
    %1 = vector.broadcast %cst : f32 to vector<16x128xf32>
    %2 = arith.maximumf %0, %1 : vector<16x128xf32>
    %3 = arith.mulf %2, %2 : vector<16x128xf32>
    %c0_1 = arith.constant 0 : index
    %c0_2 = arith.constant 0 : index
    %4 = vector.load %arg2[%c0_1, %c0_2] : memref<16x128xf32, #tpu.memory_space<vmem>>, vector<16x128xf32>
    tpu.vector_store %arg2[%c0_1, %c0_2], %3 {strides = array<i32>} : memref<16x128xf32, #tpu.memory_space<vmem>>, vector<16x128xf32>,
    return
  }
  func.func @transform_0(%arg0: i32) -> (i32, i32) {
    %c0_i32 = arith.constant 0 : i32
    %c0_i32_0 = arith.constant 0 : i32
    return %arg0, %c0_i32 : i32, i32
  }
  func.func @transform_1(%arg0: i32) -> (i32, i32) {
    %c0_i32 = arith.constant 0 : i32
    %c0_i32_0 = arith.constant 0 : i32
    return %arg0, %c0_i32 : i32, i32
  }
}

</mosaic_0001>

<bundles_post_ra>
// kernel: tpu_custom_call.1
= control target key start
LH: loop header
LB: loop body
LE: loop exit
PB: predicated region body
PF: predicated region fallthrough
CT: control target
= control target key end

     0   :  { %6 = vsyncpa [#allocation3], 0  ;;  %s144_s0 = inlined_call_operand.hbm [shape: f32[16,128], index: 0, kind: input, shape index: {}]   ;;  %s145_s1 = inlined_call_operand.hbm [shape: f32[16,128], index: 1, kind: output, shape index: {}]  }
   0x1   :  { %7 = vsyncpa [#allocation4], 0  ;;  %s100_s6 = smov [#allocation2]   ;;  %s52_s10 = scalar_lea.hbm %s144_s0, 256 }
   0x2   :  { %s13_s7 = sshll.u32 %s100_s6, 4  ;;  %p53_p0 = scmp.ne.s32.totalorder %s144_s0, %s52_s10  ;;  %s14_s7 = int_to_ptr.vmem [resolvable:$true] %s13_s7 }
   0x3   :  { %p56_p1 = scmp.lt.u32.totalorder %s52_s10, %s144_s0 }
   0x5   :  { %p58_p2 = pnand %p56_p1, %p53_p0 }
   0x7   :  { %61 = shalt.err (!%p58_p2)
}
   0x8   :  { %s62_s15 = scalar_lea.vmem %s14_s7, 256  ;;  %p67_p4 = scmp.lt.s32.totalorder %s14_s7, %s14_s7 }
   0x9   :  { %p63_p3 = scmp.ne.s32.totalorder %s14_s7, %s62_s15  ;;  %p68_p5 = scmp.lt.s32.totalorder %s62_s15, %s62_s15 }
   0xb   :  { %p69_p6 = por %p68_p5, %p67_p4 }
   0xd   :  { %p70_p7 = pnand %p69_p6, %p63_p3 }
   0xf   :  { %73 = shalt.err (!%p70_p7)
}
  0x10   :  { %s101_s16 = smov 128   ;;  %s102_s17 = smov 8  }
  0x11   :  { %19 = dma.hbm_to_vmem [thread:$0]  %s144_s0, 256, %s14_s7, [#allocation3], %s101_s16, %s101_s16, %s102_s17  }
  0x12   :  { %96 = dma.done.wait [#allocation3], 256  }
  0x13   :  { %97 = vsyncadd [#allocation3], 4294967040  ;;  %v23_v0 = vld [vmem:[#allocation2] sm:$0xff]  ;;  %v24_v1 = vld [vmem:[#allocation2 + $0x8] sm:$0xff]  ;;  %s103_s20 = smov [#allocation5]  }
  0x14   :  { %s36_s21 = sshll.u32 %s103_s20, 4  ;;  %v25_v2 = vmax.f32 %v23_v0, 0.0  ;;  %v26_v3 = vmax.f32 %v24_v1, 0.0  ;;  %s37_s21 = int_to_ptr.vmem [resolvable:$true] %s36_s21 }
  0x15   :  { %s74_s22 = scalar_lea.vmem %s37_s21, 256  ;;  %p79_p9 = scmp.lt.s32.totalorder %s37_s21, %s37_s21 }
  0x16   :  { %v27_v4 = vmul.f32 %v25_v2, %v25_v2  ;;  %v28_v5 = vmul.f32 %v26_v3, %v26_v3  ;;  %p75_p8 = scmp.ne.s32.totalorder %s37_s21, %s74_s22  ;;  %p80_p10 = scmp.lt.s32.totalorder %s74_s22, %s74_s22 }
  0x18   :  { %29 = vst [vmem:[#allocation5] sm:$0xff] %v27_v4  ;;  %30 = vst [vmem:[#allocation5 + $0x8] sm:$0xff] %v28_v5  ;;  %p81_p11 = por %p80_p10, %p79_p9 }
  0x1a   :  { %p82_p12 = pnand %p81_p11, %p75_p8 }
  0x1c   :  { %85 = shalt.err (!%p82_p12)
}
  0x1d   :  { %s86_s24 = scalar_lea.hbm %s145_s1, 256 }
  0x1e   :  { %p87_p13 = scmp.ne.s32.totalorder %s145_s1, %s86_s24  ;;  %p90_p0 = scmp.lt.u32.totalorder %s86_s24, %s145_s1 }
  0x20   :  { %p92_p1 = pnand %p90_p0, %p87_p13 }
  0x22   :  { %95 = shalt.err (!%p92_p1)
}
  0x23   :  { %42 = dma.vmem_to_hbm [thread:$0]  %s37_s21, 256, %s145_s1, [#allocation4], %s101_s16, %s101_s16, %s102_s17  }
  0x24   :  { %98 = dma.done.wait [#allocation4], 256  }
  0x25   :  { %99 = vsyncadd [#allocation4], 4294967040 }
  0x26   :  { %46 = vsyncpa [#allocation3], 1 }
  0x27   :  { %47 = vsyncpa [#allocation4], 1 }

</bundles_post_ra>
